<compile_context>
chip_gen: v7x
topology: tpu7x:2x2x1
jax: 0.10.0
libtpu: 0.0.40
codegen_flags: <defaults>
</compile_context>

<pallas_src>
import functools

import jax
import jax.numpy as jnp
from jax import lax
from jax.experimental import pallas as pl
from jax.experimental.pallas import tpu as pltpu

_LANES = 128


def _round_up(x: int, m: int) -> int:
    return ((x + m - 1) // m) * m


def _huber_kernel(yt_ref, yp_ref, o_ref, *, delta, n, block_rows, steps_per_core):
    p = pl.program_id(0)   # parallel (core) axis
    i = pl.program_id(1)   # reduction axis

    @pl.when(i == 0)
    def _init():
        o_ref[...] = jnp.zeros_like(o_ref)

    # Stream source dtype from HBM; upcast on the VPU (free under DMA bound).
    yt = yt_ref[...].astype(jnp.float32)
    yp = yp_ref[...].astype(jnp.float32)

    err = jnp.abs(yt - yp)
    quadratic = 0.5 * err * err
    linear = delta * (err - 0.5 * delta)
    loss = jnp.where(err <= delta, quadratic, linear)

    # Mask the ragged tail using the *logical* flat element index. Blocks whose
    # logical row range is past the array (index_map clamps them onto the last
    # valid block) mask to exactly zero, so nothing is double counted and any
    # garbage in out-of-bounds rows (incl. NaN/Inf) is discarded.
    logical_block = p * steps_per_core + i
    row0 = logical_block * block_rows
    row_ids = row0 + lax.broadcasted_iota(jnp.int32, loss.shape, 0)
    col_ids = lax.broadcasted_iota(jnp.int32, loss.shape, 1)
    loss = jnp.where(row_ids * _LANES + col_ids < n, loss, 0.0)

    # (block_rows,128) -> (block_rows//8, 8, 128): each (8,128) slice is one f32
    # vreg, so the axis-0 sum is pure VALU adds into the resident output block.
    # Cross-sublane / cross-lane reduction is deferred to the wrapper.
    o_ref[...] += loss.reshape(-1, 8, _LANES).sum(axis=0)


def huber_loss(y_true, y_pred, delta, *, block_rows=2048, cores=2):
    """Scalar mean Huber loss over all elements of y_true / y_pred (same shape)."""
    assert y_true.shape == y_pred.shape
    n = int(y_true.size)
    assert n > 0

    yt = y_true.reshape(-1)
    yp = y_pred.reshape(-1)

    # Lane-dense layout. Only pad when n is not a multiple of 128 (pad < 128
    # elements); for the common lane-aligned case the reshape is a bitcast and
    # there is zero pre-kernel HBM traffic.
    pad = (-n) % _LANES
    if pad:
        yt = jnp.pad(yt, (0, pad))
        yp = jnp.pad(yp, (0, pad))
    rows = (n + pad) // _LANES
    yt = yt.reshape(rows, _LANES)
    yp = yp.reshape(rows, _LANES)

    # Sublane packing: f32 -> multiple of 8 rows, bf16 -> 16, int8/fp8 -> 32.
    mult = max(32 // jnp.dtype(yt.dtype).itemsize, 32 // jnp.dtype(yp.dtype).itemsize)
    block_rows = max(mult, min(int(block_rows), _round_up(rows, mult)))
    block_rows = _round_up(block_rows, mult)

    num_blocks = pl.cdiv(rows, block_rows)
    cores = max(1, min(int(cores), num_blocks))
    steps = pl.cdiv(num_blocks, cores)
    last_block = num_blocks - 1

    def in_map(p, i):
        # Clamp so a fully-out-of-range logical block maps onto the last valid
        # block; the in-kernel flat-index mask zeroes its contribution.
        return (jnp.minimum(p * steps + i, last_block), 0)

    # VMEM budget: both inputs, double-buffered, plus small headroom.
    in_bytes = 2 * block_rows * _LANES * (yt.dtype.itemsize + yp.dtype.itemsize)
    vmem_limit = min(48 * 1024 * 1024,
                     max(4 * 1024 * 1024, int(in_bytes * 1.5) + (1 << 20)))

    cost = pl.CostEstimate(
        flops=9 * n,
        transcendentals=0,
        bytes_accessed=n * (yt.dtype.itemsize + yp.dtype.itemsize)
        + cores * 8 * _LANES * 4,
    )

    partials = pl.pallas_call(
        functools.partial(
            _huber_kernel,
            delta=float(delta),
            n=n,
            block_rows=block_rows,
            steps_per_core=steps,
        ),
        out_shape=jax.ShapeDtypeStruct((cores * 8, _LANES), jnp.float32),
        grid_spec=pltpu.PrefetchScalarGridSpec(
            num_scalar_prefetch=0,
            grid=(cores, steps),
            in_specs=[
                pl.BlockSpec((block_rows, _LANES), in_map),
                pl.BlockSpec((block_rows, _LANES), in_map),
            ],
            out_specs=pl.BlockSpec((8, _LANES), lambda p, i: (p, 0)),
        ),
        compiler_params=pltpu.CompilerParams(
            dimension_semantics=("parallel", "arbitrary"),
            vmem_limit_bytes=vmem_limit,
        ),
        cost_estimate=cost,
    )(yt, yp)

    # Tiny (cores*8, 128) reduce + mean normalization in plain JAX.
    return jnp.sum(partials) * jnp.float32(1.0 / n)


def _reference_huber(y_true, y_pred, delta):
    error = jnp.abs(y_true - y_pred)
    quadratic = 0.5 * error ** 2
    linear = delta * (error - 0.5 * delta)
    loss = jnp.where(error <= delta, quadratic, linear)
    return jnp.mean(loss)


if __name__ == "__main__":
    key = jax.random.PRNGKey(0)
    k1, k2, k3, k4 = jax.random.split(key, 4)

    delta = 1.0

    # Shape consistent with the module's usage: y_true / y_pred of [2, 4, 16, 16].
    shape = (2, 4, 16, 16)
    y_true = jax.random.normal(k1, shape, dtype=jnp.float32)
    y_pred = jax.random.normal(k2, shape, dtype=jnp.float32)
    ref = _reference_huber(y_true, y_pred, delta)

    # 1) Default config (single lane-aligned block, no padding copy).
    loss = huber_loss(y_true, y_pred, delta)
    jax.block_until_ready(loss)
    assert loss.shape == ()
    assert jnp.allclose(loss, ref, atol=1e-5, rtol=1e-5), (loss, ref)

    # 2) Tiny tiles -> exercises the 2-way parallel axis + accumulator init path.
    loss2 = huber_loss(y_true, y_pred, delta, block_rows=8)
    jax.block_until_ready(loss2)
    assert jnp.allclose(loss2, ref, atol=1e-5, rtol=1e-5), (loss2, ref)

    # 3) Ragged size (n % 128 != 0) -> exercises minimal pad + in-kernel tail mask.
    shape3 = (3, 5, 7)
    y_true3 = jax.random.normal(k3, shape3, dtype=jnp.float32)
    y_pred3 = jax.random.normal(k4, shape3, dtype=jnp.float32)
    loss3 = huber_loss(y_true3, y_pred3, delta)
    jax.block_until_ready(loss3)
    ref3 = _reference_huber(y_true3, y_pred3, delta)
    assert jnp.allclose(loss3, ref3, atol=1e-5, rtol=1e-5), (loss3, ref3)

    # 4) bf16 inputs streamed at half the bytes; math stays f32 in-kernel.
    y_true_bf = y_true.astype(jnp.bfloat16)
    y_pred_bf = y_pred.astype(jnp.bfloat16)
    loss_bf = huber_loss(y_true_bf, y_pred_bf, delta, block_rows=16)
    jax.block_until_ready(loss_bf)
    ref_bf = _reference_huber(y_true_bf.astype(jnp.float32),
                              y_pred_bf.astype(jnp.float32), delta)
    assert jnp.allclose(loss_bf, ref_bf, atol=2e-3, rtol=2e-3), (loss_bf, ref_bf)

    print("KERNEL_OK")
</pallas_src>

<mosaic_0001>
module attributes {stable_mosaic.version = 11 : i64} {
  func.func @_huber_kernel(%arg0: i32, %arg1: i32, %arg2: memref<16x128xf32, #tpu.memory_space<vmem>>, %arg3: memref<16x128xf32, #tpu.memory_space<vmem>>, %arg4: memref<8x128xf32, #tpu.memory_space<vmem>>) attributes {dimension_semantics = [#tpu.dimension_semantics<parallel>, #tpu.dimension_semantics<arbitrary>], iteration_bounds = array<i64: 1, 1>, scalar_prefetch = 0 : i64, scratch_operands = 0 : i64, tpu.core_type = #tpu.core_type<tc>, window_params = [{transform_indices = @transform_0, window_bounds = array<i64: 16, 128>}, {transform_indices = @transform_1, window_bounds = array<i64: 16, 128>}, {transform_indices = @transform_2, window_bounds = array<i64: 8, 128>}]} {
    %c0_i32 = arith.constant 0 : i32
    %0 = arith.cmpi eq, %arg1, %c0_i32 : i32
    %1 = arith.extui %0 : i1 to i32
    %c0_i32_0 = arith.constant 0 : i32
    %2 = arith.cmpi ne, %1, %c0_i32_0 : i32
    scf.if %2 {
      %cst_13 = arith.constant 0.000000e+00 : f32
      %36 = vector.broadcast %cst_13 : f32 to vector<8x128xf32>
      %c0_14 = arith.constant 0 : index
      %c0_15 = arith.constant 0 : index
      %37 = vector.load %arg4[%c0_14, %c0_15] : memref<8x128xf32, #tpu.memory_space<vmem>>, vector<8x128xf32>
      tpu.vector_store %arg4[%c0_14, %c0_15], %36 {strides = array<i32>} : memref<8x128xf32, #tpu.memory_space<vmem>>, vector<8x128xf32>,
    } else {
    }
    %c0 = arith.constant 0 : index
    %c0_1 = arith.constant 0 : index
    %3 = vector.load %arg2[%c0, %c0_1] : memref<16x128xf32, #tpu.memory_space<vmem>>, vector<16x128xf32>
    %c0_2 = arith.constant 0 : index
    %c0_3 = arith.constant 0 : index
    %4 = vector.load %arg3[%c0_2, %c0_3] : memref<16x128xf32, #tpu.memory_space<vmem>>, vector<16x128xf32>
    %5 = arith.subf %3, %4 : vector<16x128xf32>
    %6 = math.absf %5 : vector<16x128xf32>
    %cst = arith.constant 5.000000e-01 : f32
    %7 = vector.broadcast %cst : f32 to vector<16x128xf32>
    %8 = arith.mulf %7, %6 : vector<16x128xf32>
    %9 = arith.mulf %8, %6 : vector<16x128xf32>
    %cst_4 = arith.constant 5.000000e-01 : f32
    %10 = vector.broadcast %cst_4 : f32 to vector<16x128xf32>
    %11 = arith.subf %6, %10 : vector<16x128xf32>
    %cst_5 = arith.constant 1.000000e+00 : f32
    %12 = vector.broadcast %cst_5 : f32 to vector<16x128xf32>
    %13 = arith.mulf %12, %11 : vector<16x128xf32>
    %cst_6 = arith.constant 1.000000e+00 : f32
    %14 = vector.broadcast %cst_6 : f32 to vector<16x128xf32>
    %15 = arith.cmpf ole, %6, %14 : vector<16x128xf32>
    %16 = arith.select %15, %9, %13 : vector<16x128xi1>, vector<16x128xf32>
    %c1_i32 = arith.constant 1 : i32
    %17 = arith.muli %arg0, %c1_i32 : i32
    %18 = arith.addi %17, %arg1 : i32
    %c16_i32 = arith.constant 16 : i32
    %19 = arith.muli %18, %c16_i32 : i32
    %20 = tpu.iota {dimensions = array<i32: 0>} : vector<16x128xi32>
    %21 = vector.broadcast %19 : i32 to vector<16x128xi32>
    %22 = arith.addi %21, %20 : vector<16x128xi32>
    %23 = tpu.iota {dimensions = array<i32: 1>} : vector<16x128xi32>
    %c128_i32 = arith.constant 128 : i32
    %24 = vector.broadcast %c128_i32 : i32 to vector<16x128xi32>
    %25 = arith.muli %22, %24 : vector<16x128xi32>
    %26 = arith.addi %25, %23 : vector<16x128xi32>
    %c2048_i32 = arith.constant 2048 : i32
    %27 = vector.broadcast %c2048_i32 : i32 to vector<16x128xi32>
    %28 = arith.cmpi slt, %26, %27 : vector<16x128xi32>
    %cst_7 = arith.constant 0.000000e+00 : f32
    %29 = vector.broadcast %cst_7 : f32 to vector<16x128xf32>
    %30 = arith.select %28, %16, %29 : vector<16x128xi1>, vector<16x128xf32>
    %c0_8 = arith.constant 0 : index
    %c0_9 = arith.constant 0 : index
    %31 = vector.load %arg4[%c0_8, %c0_9] : memref<8x128xf32, #tpu.memory_space<vmem>>, vector<8x128xf32>
    %32 = vector.shape_cast %30 : vector<16x128xf32> to vector<2x8x128xf32>
    %cst_10 = arith.constant dense<0.000000e+00> : vector<8x128xf32>
    %33 = vector.multi_reduction <add>, %32, %cst_10 [0] : vector<2x8x128xf32> to vector<8x128xf32>
    %34 = arith.addf %31, %33 : vector<8x128xf32>
    %c0_11 = arith.constant 0 : index
    %c0_12 = arith.constant 0 : index
    %35 = vector.load %arg4[%c0_11, %c0_12] : memref<8x128xf32, #tpu.memory_space<vmem>>, vector<8x128xf32>
    tpu.vector_store %arg4[%c0_11, %c0_12], %34 {strides = array<i32>} : memref<8x128xf32, #tpu.memory_space<vmem>>, vector<8x128xf32>,
    return
  }
  func.func @transform_0(%arg0: i32, %arg1: i32) -> (i32, i32) {
    %c1_i32 = arith.constant 1 : i32
    %0 = arith.muli %arg0, %c1_i32 : i32
    %1 = arith.addi %0, %arg1 : i32
    %c0_i32 = arith.constant 0 : i32
    %2 = arith.minsi %1, %c0_i32 : i32
    %c0_i32_0 = arith.constant 0 : i32
    %c0_i32_1 = arith.constant 0 : i32
    return %2, %c0_i32_0 : i32, i32
  }
  func.func @transform_1(%arg0: i32, %arg1: i32) -> (i32, i32) {
    %c1_i32 = arith.constant 1 : i32
    %0 = arith.muli %arg0, %c1_i32 : i32
    %1 = arith.addi %0, %arg1 : i32
    %c0_i32 = arith.constant 0 : i32
    %2 = arith.minsi %1, %c0_i32 : i32
    %c0_i32_0 = arith.constant 0 : i32
    %c0_i32_1 = arith.constant 0 : i32
    return %2, %c0_i32_0 : i32, i32
  }
  func.func @transform_2(%arg0: i32, %arg1: i32) -> (i32, i32) {
    %c0_i32 = arith.constant 0 : i32
    %c0_i32_0 = arith.constant 0 : i32
    return %arg0, %c0_i32 : i32, i32
  }
}

</mosaic_0001>

<bundles_post_ra>
// kernel: tpu_custom_call.1
= control target key start
LH: loop header
LB: loop body
LE: loop exit
PB: predicated region body
PF: predicated region fallthrough
CT: control target
= control target key end

     0   :  { %7 = vsyncpa [#allocation3], 0  ;;  %s261_s0 = inlined_call_operand.hbm [shape: f32[16,128], index: 0, kind: input, shape index: {}]   ;;  %s262_s1 = inlined_call_operand.hbm [shape: f32[16,128], index: 1, kind: input, shape index: {}]   ;;  %s263_s2 = inlined_call_operand.hbm [shape: f32[8,128], index: 2, kind: output, shape index: {}]  }
   0x1   :  { %8 = vsyncpa [#allocation6], 0 }
   0x2   :  { %9 = vsyncpa [#allocation4], 0  ;;  %s205_s9 = smov [#allocation2]   ;;  %s133_s13 = scalar_lea.hbm %s261_s0, 256 }
   0x3   :  { %s21_s10 = sshll.u32 %s205_s9, 4  ;;  %p134_p0 = scmp.ne.s32.totalorder %s261_s0, %s133_s13  ;;  %s22_s10 = int_to_ptr.vmem [resolvable:$true] %s21_s10 }
   0x4   :  { %p137_p1 = scmp.lt.u32.totalorder %s133_s13, %s261_s0 }
   0x6   :  { %p139_p2 = pnand %p137_p1, %p134_p0 }
   0x8   :  { %142 = shalt.err (!%p139_p2)
}
   0x9   :  { %s143_s18 = scalar_lea.vmem %s22_s10, 256  ;;  %p148_p4 = scmp.lt.s32.totalorder %s22_s10, %s22_s10 }
   0xa   :  { %p144_p3 = scmp.ne.s32.totalorder %s22_s10, %s143_s18  ;;  %p149_p5 = scmp.lt.s32.totalorder %s143_s18, %s143_s18 }
   0xc   :  { %p150_p6 = por %p149_p5, %p148_p4 }
   0xe   :  { %p151_p7 = pnand %p150_p6, %p144_p3 }
  0x10   :  { %154 = shalt.err (!%p151_p7)
}
  0x11   :  { %s206_s19 = smov 128   ;;  %s207_s20 = smov 8  }
  0x12   :  { %27 = dma.hbm_to_vmem [thread:$0]  %s261_s0, 256, %s22_s10, [#allocation3], %s206_s19, %s206_s19, %s207_s20  }
  0x13   :  { %s208_s23 = smov [#allocation5]   ;;  %s155_s27 = scalar_lea.hbm %s262_s1, 256 }
  0x14   :  { %s39_s24 = sshll.u32 %s208_s23, 4  ;;  %p156_p8 = scmp.ne.s32.totalorder %s262_s1, %s155_s27  ;;  %s40_s24 = int_to_ptr.vmem [resolvable:$true] %s39_s24 }
  0x15   :  { %p159_p9 = scmp.lt.u32.totalorder %s155_s27, %s262_s1 }
  0x17   :  { %p161_p10 = pnand %p159_p9, %p156_p8 }
  0x19   :  { %164 = shalt.err (!%p161_p10)
}
  0x1a   :  { %s165_s4 = scalar_lea.vmem %s40_s24, 256  ;;  %p170_p12 = scmp.lt.s32.totalorder %s40_s24, %s40_s24 }
  0x1b   :  { %p166_p11 = scmp.ne.s32.totalorder %s40_s24, %s165_s4  ;;  %p171_p13 = scmp.lt.s32.totalorder %s165_s4, %s165_s4 }
  0x1d   :  { %p172_p0 = por %p171_p13, %p170_p12 }
  0x1f   :  { %p173_p1 = pnand %p172_p0, %p166_p11 }
  0x21   :  { %176 = shalt.err (!%p173_p1)
}
  0x22   :  { %45 = dma.hbm_to_vmem [thread:$0]  %s262_s1, 256, %s40_s24, [#allocation6], %s206_s19, %s206_s19, %s207_s20  }
  0x23   :  { %199 = dma.done.wait [#allocation3], 256  }
  0x24   :  { %200 = vsyncadd [#allocation3], 4294967040 }
  0x25   :  { %201 = dma.done.wait [#allocation6], 256  }
  0x26   :  { %202 = vsyncadd [#allocation6], 4294967040  ;;  %v85_v0 = vlaneseq  ;;  %v65_v5 = vld [vmem:[#allocation2] sm:$0xff]  ;;  %v66_v6 = vld [vmem:[#allocation2 + $0x8] sm:$0xff]  ;;  %s209_s1 = smov [#allocation7]  }
  0x27   :  { %v67_v7 = vld [vmem:[#allocation5] sm:$0xff]  ;;  %v68_v9 = vld [vmem:[#allocation5 + $0x8] sm:$0xff]  ;;  %s111_s6 = sshll.u32 %s209_s1, 4  ;;  %s112_s6 = int_to_ptr.vmem [resolvable:$true] %s111_s6 }
  0x28   :  { %v86_v1 = vshrl.u32 %v85_v0, 7  ;;  %v92_v3 = vand.u32 127, %v85_v0  ;;  %v69_v10 = vsub.f32 %v65_v5, %v67_v7  ;;  %v70_v11 = vsub.f32 %v66_v6, %v68_v9  ;;  %s177_s7 = scalar_lea.vmem %s112_s6, 128  ;;  %p182_p3 = scmp.lt.s32.totalorder %s112_s6, %s112_s6 }
  0x29   :  { %p178_p2 = scmp.ne.s32.totalorder %s112_s6, %s177_s7  ;;  %p183_p4 = scmp.lt.s32.totalorder %s177_s7, %s177_s7 }
  0x2a   :  { %v87_v2 = vadd.s32 8, %v86_v1  ;;  %v93_v4 = vmul.u32 128, %v86_v1  ;;  %v71_v12 = vand.u32 2147483647, %v69_v10  ;;  %v72_v14 = vand.u32 2147483647, %v70_v11 }
  0x2b   :  { %p184_p5 = por %p183_p4, %p182_p3 }
  0x2c   :  { %v94_v8 = vmul.u32 128, %v87_v2  ;;  %v95_v13 = vadd.s32 %v93_v4, %v92_v3  ;;  %v73_v16 = vmul.f32 0.5, %v71_v12  ;;  %v125_v17 = vadd.f32 -0.5, %v71_v12 }
  0x2d   :  { %v74_v18 = vmul.f32 0.5, %v72_v14  ;;  %v126_v19 = vadd.f32 -0.5, %v72_v14  ;;  %vm79_vm0 = vcmp.le.f32.partialorder %v71_v12, 1.0  ;;  %vm80_vm1 = vcmp.le.f32.partialorder %v72_v14, 1.0  ;;  %p185_p6 = pnand %p184_p5, %p178_p2 }
  0x2e   :  { %v96_v15 = vadd.s32 %v94_v8, %v92_v3  ;;  %v75_v20 = vmul.f32 %v73_v16, %v71_v12  ;;  %vm97_vm2 = vcmp.lt.s32.totalorder %v95_v13, 2048 }
  0x2f   :  { %v76_v21 = vmul.f32 %v74_v18, %v72_v14 }
  0x30   :  { %vm98_vm3 = vcmp.lt.s32.totalorder %v96_v15, 2048  ;;  %v81_v22 = vsel %vm79_vm0, %v75_v20, %v125_v17 }
  0x31   :  { %v82_v23 = vsel %vm80_vm1, %v76_v21, %v126_v19  ;;  %v99_v24 = vsel %vm97_vm2, %v81_v22, 0.0 }
  0x32   :  { %v100_v25 = vsel %vm98_vm3, %v82_v23, 0.0 }
  0x33   :  { %v102_v26 = vadd.f32 %v100_v25, %v99_v24 }
  0x35   :  { %104 = vst [vmem:[#allocation7] sm:$0xff] %v102_v26 }
  0x36   :  { %188 = shalt.err (!%p185_p6)
}
  0x37   :  { %s189_s10 = scalar_lea.hbm %s263_s2, 128 }
  0x38   :  { %p190_p7 = scmp.ne.s32.totalorder %s263_s2, %s189_s10  ;;  %p193_p8 = scmp.lt.u32.totalorder %s189_s10, %s263_s2 }
  0x3a   :  { %p195_p9 = pnand %p193_p8, %p190_p7 }
  0x3c   :  { %198 = shalt.err (!%p195_p9)
}
  0x3d   :  { %114 = dma.vmem_to_hbm [thread:$0]  %s112_s6, 128, %s263_s2, [#allocation4]  }
  0x3e   :  { %203 = dma.done.wait [#allocation4], 128  }
  0x3f   :  { %204 = vsyncadd [#allocation4], 4294967168 }
  0x40   :  { %118 = vsyncpa [#allocation3], 1 }
  0x41   :  { %119 = vsyncpa [#allocation6], 1 }
  0x42   :  { %120 = vsyncpa [#allocation4], 1 }

</bundles_post_ra>
